<compile_context>
chip_gen: v6e
topology: v6e:2x2x1
jax: 0.10.0
libtpu: 0.0.40
codegen_flags: <defaults>
</compile_context>

<pallas_src>
import jax
import jax.numpy as jnp
from jax.experimental import pallas as pl
from jax.experimental.pallas import tpu as pltpu


def attention_kernel(x_ref, w1_ref, b1_ref, w2_ref, b2_ref, o_ref):
    # x_ref: (C, tn), w1_ref: (Cm, C), b1_ref: (Cm, 1), w2_ref: (C, Cm), b2_ref: (C, 1)
    x = x_ref[...]
    h = jnp.dot(w1_ref[...], x, preferred_element_type=jnp.float32) + b1_ref[...]
    h = jnp.maximum(h, 0.0)                                   # ReLU
    y = jnp.dot(w2_ref[...], h, preferred_element_type=jnp.float32) + b2_ref[...]
    o_ref[...] = jax.nn.sigmoid(y).astype(o_ref.dtype)        # Sigmoid


def attention_forward(x_nchw, w1, b1, w2, b2, *, max_tn=8192):
    """x_nchw: (B, C, H, W) f32.  w1: (Cm, C), b1: (Cm,), w2: (C, Cm), b2: (C,)."""
    B, C, H, W = x_nchw.shape
    Cm = w1.shape[0]
    HW = H * W

    # Free view of NCHW (identical memory layout: no transpose, no copy).
    x3 = x_nchw.reshape(B, C, HW)

    # Spatial tile: either the full spatial extent (small images) or a large
    # multiple-of-128 tile.  Partial tail blocks are handled by Pallas with
    # masked boundary writes, so no wrapper-side padding is needed.  Blocks stay
    # small in VMEM (C rows only), so one setting fits v5e/v6e (128 MiB) and
    # v7x (64 MiB) alike with plenty of double-buffering headroom.
    tn = HW if HW <= max_tn else max_tn
    n_tiles = pl.cdiv(HW, tn)

    b1_2d = b1.reshape(Cm, 1)
    b2_2d = b2.reshape(C, 1)

    # Advisory cost hint so XLA schedules surrounding ops sensibly.
    cost = pl.CostEstimate(
        flops=2 * 2 * B * HW * C * Cm,
        transcendentals=B * HW * C,
        bytes_accessed=2 * B * HW * C * 4 + (2 * C * Cm + C + Cm) * 4,
    )

    # NOTE: feeding/emitting bf16 would halve HBM traffic (the only real lever
    # for this mem-bound op); kept f32 to match the f32 reference exactly.
    out3 = pl.pallas_call(
        attention_kernel,
        out_shape=jax.ShapeDtypeStruct((B, C, HW), x_nchw.dtype),
        grid_spec=pltpu.PrefetchScalarGridSpec(
            num_scalar_prefetch=0,
            grid=(B, n_tiles),
            in_specs=[
                pl.BlockSpec((None, C, tn), lambda b, j: (b, 0, j)),  # x tile (C, tn)
                pl.BlockSpec((Cm, C), lambda b, j: (0, 0)),           # w1 (resident)
                pl.BlockSpec((Cm, 1), lambda b, j: (0, 0)),           # b1
                pl.BlockSpec((C, Cm), lambda b, j: (0, 0)),           # w2 (resident)
                pl.BlockSpec((C, 1), lambda b, j: (0, 0)),            # b2
            ],
            out_specs=pl.BlockSpec((None, C, tn), lambda b, j: (b, 0, j)),
        ),
        compiler_params=pltpu.CompilerParams(
            # Both axes are purely data-parallel -> shards across v7x's 2 TensorCores.
            dimension_semantics=("parallel", "parallel"),
        ),
        cost_estimate=cost,
    )(x3, w1, b1_2d, w2, b2_2d)

    return out3.reshape(B, C, H, W)


if __name__ == "__main__":
    # Small shapes consistent with the module (channel // 8 must be >= 1).
    B, C, H, W = 2, 32, 16, 16
    Cm = C // 8

    key = jax.random.PRNGKey(0)
    kx, kw1, kb1, kw2, kb2 = jax.random.split(key, 5)

    x = jax.random.normal(kx, (B, C, H, W), dtype=jnp.float32)

    # Conv2d 1x1 weights (out, in, 1, 1) stored directly as (out, in) matmul weights.
    w1 = jax.random.normal(kw1, (Cm, C), dtype=jnp.float32) * 0.1
    b1 = jax.random.normal(kb1, (Cm,), dtype=jnp.float32) * 0.1
    w2 = jax.random.normal(kw2, (C, Cm), dtype=jnp.float32) * 0.1
    b2 = jax.random.normal(kb2, (C,), dtype=jnp.float32) * 0.1

    out = attention_forward(x, w1, b1, w2, b2)
    out = jax.block_until_ready(out)

    # Pure-JAX reference (same semantics as the PyTorch module).
    xr = x.reshape(B, C, H * W)
    h_ref = jnp.maximum(jnp.einsum("mc,bcn->bmn", w1, xr) + b1[None, :, None], 0.0)
    ref = jax.nn.sigmoid(jnp.einsum("cm,bmn->bcn", w2, h_ref) + b2[None, :, None])
    ref = ref.reshape(B, C, H, W)

    assert out.shape == (B, C, H, W)
    assert jnp.allclose(out, ref, atol=1e-5, rtol=1e-5)

    print("KERNEL_OK")
</pallas_src>

<mosaic_0001>
module attributes {stable_mosaic.version = 11 : i64} {
  func.func @attention_kernel(%arg0: i32, %arg1: i32, %arg2: memref<1x32x256xf32, #tpu.memory_space<vmem>>, %arg3: memref<4x32xf32, #tpu.memory_space<vmem>>, %arg4: memref<4x1xf32, #tpu.memory_space<vmem>>, %arg5: memref<32x4xf32, #tpu.memory_space<vmem>>, %arg6: memref<32x1xf32, #tpu.memory_space<vmem>>, %arg7: memref<1x32x256xf32, #tpu.memory_space<vmem>>) attributes {dimension_semantics = [#tpu.dimension_semantics<parallel>, #tpu.dimension_semantics<parallel>], iteration_bounds = array<i64: 2, 1>, scalar_prefetch = 0 : i64, scratch_operands = 0 : i64, tpu.core_type = #tpu.core_type<tc>, window_params = [{transform_indices = @transform_0, window_bounds = array<i64: 1, 32, 256>}, {pipeline_mode = #tpu.pipeline_mode<synchronous>, transform_indices = @transform_1, window_bounds = array<i64: 4, 32>}, {pipeline_mode = #tpu.pipeline_mode<synchronous>, transform_indices = @transform_2, window_bounds = array<i64: 4, 1>}, {pipeline_mode = #tpu.pipeline_mode<synchronous>, transform_indices = @transform_3, window_bounds = array<i64: 32, 4>}, {pipeline_mode = #tpu.pipeline_mode<synchronous>, transform_indices = @transform_4, window_bounds = array<i64: 32, 1>}, {transform_indices = @transform_5, window_bounds = array<i64: 1, 32, 256>}]} {
    %c0 = arith.constant 0 : index
    %c0_0 = arith.constant 0 : index
    %c0_1 = arith.constant 0 : index
    %0 = vector.load %arg2[%c0, %c0_0, %c0_1] : memref<1x32x256xf32, #tpu.memory_space<vmem>>, vector<1x32x256xf32>
    %1 = vector.shape_cast %0 : vector<1x32x256xf32> to vector<32x256xf32>
    %c0_2 = arith.constant 0 : index
    %c0_3 = arith.constant 0 : index
    %2 = vector.load %arg3[%c0_2, %c0_3] : memref<4x32xf32, #tpu.memory_space<vmem>>, vector<4x32xf32>
    %cst = arith.constant dense<0.000000e+00> : vector<4x256xf32>
    %3 = tpu.matmul %2, %1, %cst {dimension_numbers = #tpu.dot_dimension_numbers<[1], [0], [0], [1], [0, 0, 1, 1], [], []>} : vector<4x32xf32>, vector<32x256xf32>, vector<4x256xf32> -> vector<4x256xf32>
    %c0_4 = arith.constant 0 : index
    %c0_5 = arith.constant 0 : index
    %4 = vector.load %arg4[%c0_4, %c0_5] : memref<4x1xf32, #tpu.memory_space<vmem>>, vector<4x1xf32>
    %5 = vector.broadcast %4 : vector<4x1xf32> to vector<4x256xf32>
    %6 = arith.addf %3, %5 : vector<4x256xf32>
    %cst_6 = arith.constant 0.000000e+00 : f32
    %7 = vector.broadcast %cst_6 : f32 to vector<4x256xf32>
    %8 = arith.maximumf %6, %7 : vector<4x256xf32>
    %c0_7 = arith.constant 0 : index
    %c0_8 = arith.constant 0 : index
    %9 = vector.load %arg5[%c0_7, %c0_8] : memref<32x4xf32, #tpu.memory_space<vmem>>, vector<32x4xf32>
    %cst_9 = arith.constant dense<0.000000e+00> : vector<32x256xf32>
    %10 = tpu.matmul %9, %8, %cst_9 {dimension_numbers = #tpu.dot_dimension_numbers<[1], [0], [0], [1], [0, 0, 1, 1], [], []>} : vector<32x4xf32>, vector<4x256xf32>, vector<32x256xf32> -> vector<32x256xf32>
    %c0_10 = arith.constant 0 : index
    %c0_11 = arith.constant 0 : index
    %11 = vector.load %arg6[%c0_10, %c0_11] : memref<32x1xf32, #tpu.memory_space<vmem>>, vector<32x1xf32>
    %12 = vector.broadcast %11 : vector<32x1xf32> to vector<32x256xf32>
    %13 = arith.addf %10, %12 : vector<32x256xf32>
    %14 = arith.negf %13 : vector<32x256xf32>
    %15 = math.exp %14 : vector<32x256xf32>
    %cst_12 = arith.constant 1.000000e+00 : f32
    %16 = vector.broadcast %cst_12 : f32 to vector<32x256xf32>
    %17 = arith.addf %16, %15 : vector<32x256xf32>
    %18 = arith.divf %16, %17 : vector<32x256xf32>
    %c0_13 = arith.constant 0 : index
    %c0_14 = arith.constant 0 : index
    %c0_15 = arith.constant 0 : index
    %19 = vector.load %arg7[%c0_13, %c0_14, %c0_15] : memref<1x32x256xf32, #tpu.memory_space<vmem>>, vector<1x32x256xf32>
    %20 = vector.shape_cast %19 : vector<1x32x256xf32> to vector<32x256xf32>
    %21 = vector.shape_cast %18 : vector<32x256xf32> to vector<1x32x256xf32>
    tpu.vector_store %arg7[%c0_13, %c0_14, %c0_15], %21 {strides = array<i32>} : memref<1x32x256xf32, #tpu.memory_space<vmem>>, vector<1x32x256xf32>,
    return
  }
  func.func @transform_0(%arg0: i32, %arg1: i32) -> (i32, i32, i32) {
    %c0_i32 = arith.constant 0 : i32
    %c0_i32_0 = arith.constant 0 : i32
    return %arg0, %c0_i32, %arg1 : i32, i32, i32
  }
  func.func @transform_1(%arg0: i32, %arg1: i32) -> (i32, i32) {
    %c0_i32 = arith.constant 0 : i32
    %c0_i32_0 = arith.constant 0 : i32
    %c0_i32_1 = arith.constant 0 : i32
    return %c0_i32, %c0_i32_0 : i32, i32
  }
  func.func @transform_2(%arg0: i32, %arg1: i32) -> (i32, i32) {
    %c0_i32 = arith.constant 0 : i32
    %c0_i32_0 = arith.constant 0 : i32
    %c0_i32_1 = arith.constant 0 : i32
    return %c0_i32, %c0_i32_0 : i32, i32
  }
  func.func @transform_3(%arg0: i32, %arg1: i32) -> (i32, i32) {
    %c0_i32 = arith.constant 0 : i32
    %c0_i32_0 = arith.constant 0 : i32
    %c0_i32_1 = arith.constant 0 : i32
    return %c0_i32, %c0_i32_0 : i32, i32
  }
  func.func @transform_4(%arg0: i32, %arg1: i32) -> (i32, i32) {
    %c0_i32 = arith.constant 0 : i32
    %c0_i32_0 = arith.constant 0 : i32
    %c0_i32_1 = arith.constant 0 : i32
    return %c0_i32, %c0_i32_0 : i32, i32
  }
  func.func @transform_5(%arg0: i32, %arg1: i32) -> (i32, i32, i32) {
    %c0_i32 = arith.constant 0 : i32
    %c0_i32_0 = arith.constant 0 : i32
    return %arg0, %c0_i32, %arg1 : i32, i32, i32
  }
}

</mosaic_0001>

<bundles_post_ra>
// kernel: tpu_custom_call.1
= control target key start
LH: loop header
LB: loop body
LE: loop exit
PB: predicated region body
PF: predicated region fallthrough
CT: control target
= control target key end

     0   :  { %10 = vsyncpa [#allocation3], 0  ;;  %s1113_s0 = inlined_call_operand.hbm [shape: f32[2,32,256], index: 0, kind: input, shape index: {}]   ;;  %s1114_s1 = inlined_call_operand.vmem [shape: f32[4,32], index: 1, kind: input, shape index: {}]   ;;  %s1115_s2 = inlined_call_operand.vmem [shape: f32[4,1], index: 2, kind: input, shape index: {}]   ;;  %s1116_s3 = inlined_call_operand.vmem [shape: f32[32,4], index: 3, kind: input, shape index: {}]   ;;  %s1117_s4 = inlined_call_operand.vmem [shape: f32[32,1], index: 4, kind: input, shape index: {}]   ;;  %s1118_s5 = inlined_call_operand.hbm [shape: f32[2,32,256], index: 5, kind: output, shape index: {}]  }
   0x1   :  { %12 = vsyncpa [#allocation3 + $0x1], 0 }
   0x2   :  { %13 = vsyncpa [#allocation4], 0 }
   0x3   :  { %15 = vsyncpa [#allocation4 + $0x1], 0  ;;  %s933_s18 = smov 0   ;;  %s935_s19 = smov 0  }
   0x4   :  { %s937_s20 = smov 0   ;;  %s939_s21 = smov 0  }
   0x5   :  { %s941_s22 = smov 0   ;;  %s943_s23 = smov 0  }
   0x6 LB: > { %s651_s24 = sadd.s32 4294967295, %s893_s23   ;;  %s652_s25 = sadd.s32 4294967294, %s893_s23   ;;  %s893_s23 = sphi %s943_s23, %s21_s23   ;;  %s889_s22 = sphi %s941_s22, %s1129_s22   ;;  %s885_s21 = sphi %s939_s21, %s1128_s21   ;;  %s881_s20 = sphi %s937_s20, %s1127_s20   ;;  %s877_s19 = sphi %s935_s19, %s1126_s19   ;;  %s873_s18 = sphi %s933_s18, %s1125_s18  }
   0x7   : > { %s33_s26 = sadd.s32 1, %s889_s22  ;;  %s42_s27 = sadd.s32 1, %s881_s20 }
   0x8   : > { %p35_p0 = scmp.ge.s32.totalorder %s33_s26, 2  ;;  %p49_p1 = scmp.ne.s32.totalorder %s881_s20, %s877_s19 }
   0x9   : > { %p50_p2 = scmp.eq.s32.totalorder %s893_s23, 0  ;;  %p55_p3 = scmp.ne.s32.totalorder %s877_s19, %s873_s18 }
   0xa   : > { %s1131_s26 = smov (%p35_p0, %s33_s26), 0  ;;  %p56_p5 = scmp.eq.s32.totalorder %s651_s24, 0 }
   0xb   : > { %p974_p4 = por %p50_p2, %p49_p1  ;;  %s37_s29 = ssub.s32 %s889_s22, %s1131_s26 }
   0xc   : > { %p165_p6 = scmp.eq.s32.totalorder %s651_s24, 1  ;;  %p40_p7 = scmp.eq.s32.totalorder %s37_s29, 0 }
   0xd   : > { %p980_p8 = por %p56_p5, %p55_p3  ;;  %p171_p10 = scmp.eq.s32.totalorder %s652_s25, 1 }
   0xe   : > { %p984_p9 = por %p165_p6, %p49_p1  ;;  %p695_p13 = scmp.lt.s32.totalorder %s893_s23, 2 }
   0xf   : > { %s989_s7 = scalar_select %p40_p7, %s881_s20, %s42_s27  }
  0x10   : > { %p991_p11 = por %p171_p10, %p55_p3  ;;  %s203_s9 = sand.u32 1, %s881_s20  }
  0x11   : > { %s655_s10 = sshll.u32 %s203_s9, 6  ;;  %s681_s11 = sshll.u32 %s889_s22, 10 }
  0x12   : > { %s215_s14 = scalar_lea.hbm %s1113_s0, %s681_s11  ;;  %s207_s15 = scalar_lea.vmem [#allocation2], %s655_s10 }
  0x13   : > { %s216_s16 = sshll.u32 %s207_s15, 4  ;;  %p1004_p0 = pnand %p695_p13, %p974_p4  ;;  %s217_s16 = int_to_ptr.vmem [resolvable:$true] %s216_s16 }
  0x14   : > { %p658_p1 = scmp.ge.s32.totalorder %s893_s23, 1  ;;  %s204_s24 = scalar_lea.sflag [#allocation3], %s203_s9 }
  0x15   : > { %p787_p2 = pneg %p1004_p0  ;;  %s798_s25 = scalar_lea.vmem %s217_s16, 1024 }
  0x16   : > { %p799_p3 = scmp.ne.s32.totalorder %s217_s16, %s798_s25  ;;  %s895_s27 = smov [#allocation2]  }
  0x17   : > { %s803_s29 = sshll.u32 %s895_s27, 4  ;;  %s804_s29 = int_to_ptr.vmem [resolvable:$false] %s803_s29 }
  0x18   : > { %p801_p5 = pnand %p799_p3, %p787_p2  ;;  %s805_s10 = scalar_lea.vmem %s804_s29, 2048 }
  0x19   : > { %p806_p7 = scmp.lt.s32.totalorder %s217_s16, %s804_s29  ;;  %p807_p10 = scmp.lt.s32.totalorder %s805_s10, %s798_s25 }
  0x1a   : > { %p802_p6 = pneg %p801_p5 }
  0x1b   : > { %p808_p12 = por %p807_p10, %p806_p7 }
  0x1d   : > { %p809_p4 = pnand %p808_p12, %p802_p6 }
  0x1f   : > { %812 = shalt.err (!%p809_p4)
}
  0x20   : > { %s896_s28 = smov 256   ;;  %s897_s9 = smov 16  }
  0x21   : > { %690 = dma.hbm_to_vmem [thread:$0]  (!%p1004_p0), %s215_s14, 1024, %s217_s16, %s204_s24, %s896_s28, %s896_s28, %s897_s9  }
  0x22   : > { %p224_p13 = scmp.lt.s32.totalorder %s893_s23, 3 }
  0x24   : > { %p225_p2 = pnand %p658_p1, %p224_p13 }
  0x25   : > { %s1017_s11 = sand.u32 (!%p225_p2), 1, %s877_s19  }
  0x26   : > { %228 = sbr.rel (%p225_p2) target bundleno = 511 (0x1ff), region = 40  ;;  %s659_s12 = sshll.u32 (!%p225_p2), %s1017_s11, 6 }
  0x27   : > { %s231_s13 = scalar_lea.sflag (!%p225_p2), [#allocation3], %s1017_s11  ;;  %s234_s15 = scalar_lea.vmem (!%p225_p2), [#allocation2], %s659_s12 }
  0x2b   : > { %864 = dma.done.wait (%p980_p8), %s231_s13, 1024  }
  0x2c   : > { %866 = vsyncadd (%p980_p8), %s231_s13, 4294966272  ;;  %v898_v0 = vmov 0.0   ;;  %v899_v1 = vmov 0   ;;  %v270_v2 = vld [vmem:[%s234_s15 + $0x38] sm:$0xff]  ;;  %v269_v3 = vld [vmem:[%s234_s15 + $0x30] sm:$0xff]  ;;  %vm278_vm0 = vcmask 261120  }
  0x2d   : > { %346 = vmatprep.mubr.f32.mxu0 %v898_v0  ;;  %751 = vset.pattern.permute.xlu0 %v899_v1  ;;  %v268_v4 = vld [vmem:[%s234_s15 + $0x28] sm:$0xff]  ;;  %v267_v5 = vld [vmem:[%s234_s15 + $0x20] sm:$0xff]  ;;  %v266_v6 = vld [vmem:[%s234_s15 + $0x18] sm:$0xff]  ;;  %vm396_vm1 = vcmask 1043456   ;;  %vm383_vm2 = vcmask 31744   ;;  %s260_s29 = scalar_lea.vmem [#allocation5], %s659_s12 }
  0x2e   : > { %467 = vmatprep.mubr.f32.mxu1 %v898_v0  ;;  %752 = vset.pattern.permute.xlu1 %v899_v1  ;;  %v265_v7 = vld [vmem:[%s234_s15 + $0x10] sm:$0xff]  ;;  %v272_v8 = vld [vmem:[%s1115_s2] sm:$0xf]  ;;  %v264_v9 = vld [vmem:[%s234_s15 + $0x8] sm:$0xff]  ;;  %s682_s10 = sshll.u32 %s885_s21, 10  ;;  %s564_s28 = sshll.u32 %s260_s29, 4  ;;  %s1065_s28 = int_to_ptr.vmem [resolvable:$true] %s564_s28 }
  0x2f   : > { %306 = vmatprep.subr.mxu0 %v270_v2  ;;  %275 = vperm.xlu0 %751, %v272_v8   ;;  %v263_v10 = vld [vmem:[%s234_s15] sm:$0xff]  ;;  %v362_v13 = vld [vmem:[%s1117_s4 + $0x18] sm:$0xff]  ;;  %v360_v14 = vld [vmem:[%s1117_s4 + $0x8] sm:$0xff]  ;;  %s1063_s12 = scalar_lea.hbm %s1118_s5, %s682_s10  ;;  %s549_s15 = scalar_lea.sflag [#allocation4], %s1017_s11 }
  0x30   : > { %307 = vmatpush1.msra.mxu0 %v269_v3  ;;  %v359_v11 = vld [vmem:[%s1117_s4] sm:$0xff]  ;;  %370 = vperm.xlu1 %752, %v360_v14   ;;  %v361_v15 = vld [vmem:[%s1117_s4 + $0x10] sm:$0xff]  ;;  %v356_v24 = vld [vmem:[%s1116_s3 + $0x8] sm:$0xff]  ;;  %s813_s14 = scalar_lea.vmem %s1065_s28, 1024  ;;  %s900_s21 = smov [#allocation5]  }
  0x31   : > { %308 = vmatprep.subr.mxu0 %v268_v4  ;;  %v271_v12 = vld [vmem:[%s1114_s1] sm:$0xf]  ;;  %v357_v25 = vld [vmem:[%s1116_s3 + $0x10] sm:$0xff]  ;;  %v358_v26 = vld [vmem:[%s1116_s3 + $0x18] sm:$0xff]  ;;  %p814_p8 = scmp.ne.s32.totalorder %s1065_s28, %s813_s14  ;;  %s817_s16 = sshll.u32 %s900_s21, 4  ;;  %s818_s16 = int_to_ptr.vmem [resolvable:$false] %s817_s16 }
  0x32   : > { %309 = vmatpush1.msra.mxu0 %v267_v5  ;;  %v355_v23 = vld [vmem:[%s1116_s3] sm:$0xff]  ;;  %s819_s30 = scalar_lea.vmem %s818_s16, 2048  ;;  %p820_p1 = scmp.lt.s32.totalorder %s1065_s28, %s818_s16 }
  0x33   : > { %310 = vmatprep.subr.mxu0 %v266_v6  ;;  %365 = vperm.xlu0 %751, %v359_v11   ;;  %p815_p12 = pnand %p814_p8, %p984_p9  ;;  %p821_p3 = scmp.lt.s32.totalorder %s819_s30, %s813_s14 }
  0x34   : > { %311 = vmatpush1.msra.mxu0 %v265_v7  ;;  %375 = vperm.xlu1 %752, %v361_v15  }
  0x35   : > { %312 = vmatprep.subr.mxu0 %v264_v9  ;;  %p816_p0 = pneg %p815_p12  ;;  %p822_p5 = por %p821_p3, %p820_p1 }
  0x36   : > { %313 = vmatpush1.msra.mxu0 %v263_v10 }
  0x37   : > { %661 = vmatmul.mubr.msk.f32.vlgmr.msra.gmra.mxu0 %vm278_vm0, %v271_v12  ;;  %380 = vperm.xlu0 %751, %v362_v13   ;;  %p823_p6 = pnand %p822_p5, %p816_p0 }
  0xaa   : > { %v276_v17 = vpop.permute.xlu0 %275 }
  0xab   : > { %v371_v29 = vpop.permute.xlu1 %370 }
  0xae   : > { %v366_v27 = vpop.permute.xlu0 %365 }
  0xaf   : > { %v376_v38 = vpop.permute.xlu1 %375 }
  0xb2   : > { %v381_v47 = vpop.permute.xlu0 %380 }
  0xf7   : > { %v348_v16 = vpop.f32.mrf.mxu0 }
  0xf8   : > { %v349_v18 = vadd.f32 %v348_v16, %v276_v17 }
  0xf9   : > { %v350_v19 = vpop.f32.mrf.mxu0 }
  0xfa   : > { %v351_v20 = vadd.f32 %v350_v19, %v276_v17  ;;  %v353_v22 = vmax.f32 %v349_v18, 0.0 }
  0xfc   : > { %v354_v21 = vmax.f32 %v351_v20, 0.0 }
  0xfe   : > { %662 = vmatprep.subr.msk.mxu1 %vm396_vm1, %v354_v21 }
  0xff   : > { %663 = vmatpush1.msk.msra.mxu1 %vm396_vm1, %v353_v22 }
 0x100   : > { %664 = vmatmul.mubr.msk.f32.vlgmr.msra.gmra.mxu1 %vm383_vm2, %v355_v23 }
 0x101   : > { %473 = vmatprep.mubr.f32.mxu1 %v898_v0 }
 0x104   : > { %665 = vmatmul.mubr.msk.f32.gmra.mxu1 %vm383_vm2, %v356_v24 }
 0x105   : > { %479 = vmatprep.mubr.f32.mxu1 %v898_v0 }
 0x108   : > { %666 = vmatmul.mubr.msk.f32.gmra.mxu1 %vm383_vm2, %v357_v25 }
 0x109   : > { %485 = vmatprep.mubr.f32.mxu1 %v898_v0 }
 0x10c   : > { %667 = vmatmul.mubr.msk.f32.gmra.mxu1 %vm383_vm2, %v358_v26 }
 0x1c0   : > { %v469_v28 = vpop.f32.mrf.mxu1 }
 0x1c1   : > { %v470_v30 = vadd.f32 %v469_v28, %v366_v27 }
 0x1c2   : > { %v471_v31 = vpop.f32.mrf.mxu1 }
 0x1c3   : > { %v668_v32 = vmul.f32 -1.442695, %v470_v30  ;;  %v472_v33 = vadd.f32 %v471_v31, %v366_v27 }
 0x1c4   : > { %v475_v34 = vpop.f32.mrf.mxu1 }
 0x1c5   : > { %753 = vpow2.f32 %v668_v32  ;;  %v669_v35 = vmul.f32 -1.442695, %v472_v33  ;;  %v476_v36 = vadd.f32 %v475_v34, %v371_v29 }
 0x1c6   : > { %v477_v37 = vpop.f32.mrf.mxu1 }
 0x1c7   : > { %755 = vpow2.f32 %v669_v35  ;;  %v670_v39 = vmul.f32 -1.442695, %v476_v36  ;;  %v478_v40 = vadd.f32 %v477_v37, %v371_v29 }
 0x1c8   : > { %v481_v41 = vpop.f32.mrf.mxu1 }
 0x1c9   : > { %757 = vpow2.f32 %v670_v39  ;;  %v671_v42 = vmul.f32 -1.442695, %v478_v40  ;;  %v482_v43 = vadd.f32 %v481_v41, %v376_v38 }
 0x1ca   : > { %v483_v44 = vpop.f32.mrf.mxu1 }
 0x1cb   : > { %759 = vpow2.f32 %v671_v42  ;;  %v672_v45 = vmul.f32 -1.442695, %v482_v43  ;;  %v484_v46 = vadd.f32 %v483_v44, %v376_v38 }
 0x1cc   : > { %v487_v48 = vpop.f32.mrf.mxu1 }
 0x1cd   : > { %761 = vpow2.f32 %v672_v45  ;;  %v673_v49 = vmul.f32 -1.442695, %v484_v46  ;;  %v488_v50 = vadd.f32 %v487_v48, %v381_v47 }
 0x1ce   : > { %v489_v51 = vpop.f32.mrf.mxu1 }
 0x1cf   : > { %763 = vpow2.f32 %v673_v49  ;;  %v674_v52 = vmul.f32 -1.442695, %v488_v50  ;;  %v490_v53 = vadd.f32 %v489_v51, %v381_v47 }
 0x1d1   : > { %765 = vpow2.f32 %v674_v52  ;;  %v675_v54 = vmul.f32 -1.442695, %v490_v53 }
 0x1d2   : > { %v754_v55 = vpop.eup %753 }
 0x1d3   : > { %v516_v56 = vadd.f32 1.0, %v754_v55  ;;  %767 = vpow2.f32 %v675_v54 }
 0x1d4   : > { %v756_v57 = vpop.eup %755 }
 0x1d5   : > { %769 = vrcp.f32 %v516_v56  ;;  %v517_v58 = vadd.f32 1.0, %v756_v57 }
 0x1d6   : > { %v758_v59 = vpop.eup %757 }
 0x1d7   : > { %771 = vrcp.f32 %v517_v58  ;;  %v518_v60 = vadd.f32 1.0, %v758_v59 }
 0x1d8   : > { %v760_v61 = vpop.eup %759 }
 0x1d9   : > { %773 = vrcp.f32 %v518_v60  ;;  %v519_v62 = vadd.f32 1.0, %v760_v61 }
 0x1da   : > { %v762_v63 = vpop.eup %761 }
 0x1db   : > { %775 = vrcp.f32 %v519_v62  ;;  %v520_v0 = vadd.f32 1.0, %v762_v63 }
 0x1dc   : > { %v764_v1 = vpop.eup %763 }
 0x1dd   : > { %777 = vrcp.f32 %v520_v0  ;;  %v521_v2 = vadd.f32 1.0, %v764_v1 }
 0x1de   : > { %v766_v3 = vpop.eup %765 }
 0x1df   : > { %779 = vrcp.f32 %v521_v2  ;;  %v522_v4 = vadd.f32 1.0, %v766_v3 }
 0x1e0   : > { %v768_v5 = vpop.eup %767 }
 0x1e1   : > { %781 = vrcp.f32 %v522_v4  ;;  %v523_v6 = vadd.f32 1.0, %v768_v5 }
 0x1e2   : > { %v770_v7 = vpop.eup %769 }
 0x1e3   : > { %540 = vst [vmem:[%s260_s29] sm:$0xff] %v770_v7  ;;  %783 = vrcp.f32 %v523_v6 }
 0x1e4   : > { %v772_v8 = vpop.eup %771 }
 0x1e5   : > { %541 = vst [vmem:[%s260_s29 + $0x8] sm:$0xff] %v772_v8 }
 0x1e6   : > { %v774_v9 = vpop.eup %773 }
 0x1e7   : > { %542 = vst [vmem:[%s260_s29 + $0x10] sm:$0xff] %v774_v9 }
 0x1e8   : > { %v776_v10 = vpop.eup %775 }
 0x1e9   : > { %543 = vst [vmem:[%s260_s29 + $0x18] sm:$0xff] %v776_v10 }
 0x1ea   : > { %v778_v11 = vpop.eup %777 }
 0x1eb   : > { %544 = vst [vmem:[%s260_s29 + $0x20] sm:$0xff] %v778_v11 }
 0x1ec   : > { %v780_v12 = vpop.eup %779 }
 0x1ed   : > { %545 = vst [vmem:[%s260_s29 + $0x28] sm:$0xff] %v780_v12 }
 0x1ee   : > { %v782_v13 = vpop.eup %781 }
 0x1ef   : > { %546 = vst [vmem:[%s260_s29 + $0x30] sm:$0xff] %v782_v13 }
 0x1f0   : > { %v784_v14 = vpop.eup %783 }
 0x1f1   : > { %547 = vst [vmem:[%s260_s29 + $0x38] sm:$0xff] %v784_v14 }
 0x1f2   : > { %826 = shalt.err (!%p823_p6)
}
 0x1f3   : > { %s827_s17 = scalar_lea.hbm %s1063_s12, 1024  ;;  %s831_s27 = scalar_lea.hbm %s1118_s5, 2048 }
 0x1f4   : > { %p828_p7 = scmp.ne.s32.totalorder %s1063_s12, %s827_s17  ;;  %p832_p13 = scmp.lt.s32.totalorder %s1063_s12, %s1118_s5 }
 0x1f5   : > { %p833_p2 = scmp.lt.s32.totalorder %s831_s27, %s827_s17 }
 0x1f6   : > { %p829_p10 = pnand %p828_p7, %p984_p9 }
 0x1f7   : > { %p834_p8 = por %p833_p2, %p832_p13 }
 0x1f8   : > { %p830_p4 = pneg %p829_p10 }
 0x1fa   : > { %p835_p12 = pnand %p834_p8, %p830_p4 }
 0x1fc   : > { %838 = shalt.err (!%p835_p12)
}
 0x1fd   : > { %s901_s9 = smov 256   ;;  %s902_s13 = smov 16  }
 0x1fe   : > { %685 = dma.vmem_to_hbm [thread:$0]  (%p984_p9), %s1065_s28, 1024, %s1063_s12, %s549_s15, %s901_s9, %s901_s9, %s902_s13  }
 0x1ff PF: > { %s579_s14 = sand.u32 1, %s873_s18   ;;  %p1124_p0 = scmp.ge.s32.totalorder %s893_s23, 2 }
 0x200   : > { %s580_s21 = scalar_lea.sflag [#allocation4], %s579_s14 }
 0x201   : > { %p692_p1 = pnand %p1124_p0, %p991_p11 }
 0x203   : > { %p693_p3 = pneg %p692_p1 }
 0x205   : > { %868 = dma.done.wait (%p693_p3), %s580_s21, 1024  }
 0x206   : > { %870 = vsyncadd (%p693_p3), %s580_s21, 4294966272  ;;  %s21_s23 = sadd.s32 1, %s893_s23   ;;  %s1125_s18 = smov %s877_s19 }
 0x207   : > { %p18_p5 = scmp.ge.s32.totalorder %s21_s23, 4   ;;  %s1126_s19 = smov %s881_s20 }
 0x208   : > { %s1127_s20 = smov %s989_s7  ;;  %s1128_s21 = smov %s889_s22 }
 0x209   : > { %s1129_s22 = smov %s1131_s26  ;;  %20 = sbr.rel (!%p18_p5) target bundleno = 6 (0x6), region = 85 }
 0x20e   :  { %585 = vsyncpa [#allocation3], 1 }
 0x20f   :  { %587 = vsyncpa [#allocation3 + $0x1], 1 }
 0x210   :  { %588 = vsyncpa [#allocation4], 1 }
 0x211   :  { %590 = vsyncpa [#allocation4 + $0x1], 1 }

</bundles_post_ra>
